<compile_context>
chip_gen: v7x
topology: tpu7x:2x2x1
jax: 0.10.0
libtpu: 0.0.40
codegen_flags: <defaults>
</compile_context>

<pallas_src>
import math

import jax
import jax.numpy as jnp
from jax.experimental import pallas as pl
from jax.experimental.pallas import tpu as pltpu

_N_CORES = 2          # leading "parallel" grid axis (megacore split on v7x)
_LANES = 128


def _cdiv(a, b):
    return -(-a // b)


def _round_up(a, m):
    return _cdiv(a, m) * m


def _rd_partial_kernel(xh1_ref, xh2_ref, xh4_ref, tgt_ref, lk_ref, out_ref,
                       acc1, acc2, acc4, accl):
    """Accumulates per-core partial sums; finalizes into one (8,128) block.

    out lanes: 0 -> sum((x_hat   - t)^2)
               1 -> sum((x_hat2  - t)^2)
               2 -> sum((x_hat4  - t)^2)
               3 -> sum(log(likelihoods))
    """
    i = pl.program_id(1)

    @pl.when(i == 0)
    def _init():
        acc1[...] = jnp.zeros_like(acc1)
        acc2[...] = jnp.zeros_like(acc2)
        acc4[...] = jnp.zeros_like(acc4)
        accl[...] = jnp.zeros_like(accl)

    tgt = tgt_ref[...].astype(jnp.float32)
    d1 = xh1_ref[...].astype(jnp.float32) - tgt
    d2 = xh2_ref[...].astype(jnp.float32) - tgt
    d4 = xh4_ref[...].astype(jnp.float32) - tgt
    acc1[...] += d1 * d1
    acc2[...] += d2 * d2
    acc4[...] += d4 * d4
    accl[...] += jnp.log(lk_ref[...].astype(jnp.float32))

    @pl.when(i == pl.num_programs(1) - 1)
    def _finalize():
        s1 = jnp.sum(acc1[...])
        s2 = jnp.sum(acc2[...])
        s4 = jnp.sum(acc4[...])
        sl = jnp.sum(accl[...])
        lane = jax.lax.broadcasted_iota(jnp.int32, (8, _LANES), 1)
        vec = jnp.where(lane == 0, s1, 0.0)
        vec = jnp.where(lane == 1, s2, vec)
        vec = jnp.where(lane == 2, s4, vec)
        vec = jnp.where(lane == 3, sl, vec)
        out_ref[...] = vec.astype(jnp.float32)


def _flatten_pad(x, padded_elems, pad_value):
    """Flatten to 1D, pad to `padded_elems`, reshape lane-dense (rows, 128)."""
    flat = jnp.ravel(x)
    n = flat.shape[0]
    if padded_elems > n:
        flat = jnp.pad(flat, (0, padded_elems - n), constant_values=pad_value)
    return flat.reshape(padded_elems // _LANES, _LANES)


def rate_distortion_loss_ms(output, target, lmbda=0.01, max_block_rows=1024):
    """JAX/Pallas equivalent of RateDistortionLoss_MS.forward (metrics='mse').

    output: dict with 'x_hat', 'x_hat_ds2', 'x_hat_ds4' (same shape as target,
            NCHW) and 'likelihoods' = {'y': ..., 'z': ...} (any positive shapes).
    target: NCHW array.
    """
    N, C, H, W = target.shape
    num_pixels = N * H * W
    num_elems = N * C * H * W

    lk_parts = [jnp.ravel(l) for l in output['likelihoods'].values()]
    lk_flat = jnp.concatenate(lk_parts) if len(lk_parts) > 1 else lk_parts[0]
    lk_elems = int(lk_flat.shape[0])

    # ---- tiling plan -------------------------------------------------------
    # Image tensors: (block_rows, 128) tiles, block_rows<=1024 -> 512 KiB f32
    # tiles; 4 inputs x 2 pipeline buffers + 3 accumulators ~= 5.5 MiB, well
    # inside the default scoped VMEM on v5e/v6e/v7x.
    rows = _cdiv(num_elems, _LANES)
    rows_per_core = _cdiv(rows, _N_CORES)
    block_rows = max(8, min(int(max_block_rows), _round_up(rows_per_core, 8)))
    steps_per_core = _cdiv(rows_per_core, block_rows)
    padded_rows = _N_CORES * steps_per_core * block_rows

    # Likelihoods (~1/10th the image bytes) are streamed alongside in small
    # chunks aligned to the same grid, padded with 1.0 (log(1) == 0).
    total_steps = _N_CORES * steps_per_core
    lk_rows = _cdiv(lk_elems, _LANES)
    lk_block_rows = max(8, _round_up(_cdiv(lk_rows, total_steps), 8))
    lk_padded_rows = total_steps * lk_block_rows

    xh1 = _flatten_pad(output['x_hat'], padded_rows * _LANES, 0)
    xh2 = _flatten_pad(output['x_hat_ds2'], padded_rows * _LANES, 0)
    xh4 = _flatten_pad(output['x_hat_ds4'], padded_rows * _LANES, 0)
    tgt = _flatten_pad(target, padded_rows * _LANES, 0)
    lk = _flatten_pad(lk_flat, lk_padded_rows * _LANES, 1)

    img_spec = pl.BlockSpec((block_rows, _LANES),
                            lambda c, i: (c * steps_per_core + i, 0))
    lk_spec = pl.BlockSpec((lk_block_rows, _LANES),
                           lambda c, i: (c * steps_per_core + i, 0))
    out_spec = pl.BlockSpec((8, _LANES), lambda c, i: (c, 0))

    partials = pl.pallas_call(
        _rd_partial_kernel,
        grid=(_N_CORES, steps_per_core),
        in_specs=[img_spec, img_spec, img_spec, img_spec, lk_spec],
        out_specs=out_spec,
        out_shape=jax.ShapeDtypeStruct((_N_CORES * 8, _LANES), jnp.float32),
        scratch_shapes=[pltpu.VMEM((block_rows, _LANES), jnp.float32),
                        pltpu.VMEM((block_rows, _LANES), jnp.float32),
                        pltpu.VMEM((block_rows, _LANES), jnp.float32),
                        pltpu.VMEM((lk_block_rows, _LANES), jnp.float32)],
        compiler_params=pltpu.CompilerParams(
            dimension_semantics=("parallel", "arbitrary")),
    )(xh1, xh2, xh4, tgt, lk)

    # Combine the two per-core partial-sum rows; a handful of scalar flops.
    totals = jnp.sum(partials[0::8], axis=0)          # (128,)
    sum_sq1, sum_sq2, sum_sq4, sum_log = (totals[0], totals[1],
                                          totals[2], totals[3])

    inv_elems = 1.0 / float(num_elems)                # nn.MSELoss: mean NCHW
    mse1 = sum_sq1 * inv_elems
    mse2 = sum_sq2 * inv_elems
    mse4 = sum_sq4 * inv_elems
    bpp = sum_log * (1.0 / (-math.log(2) * float(num_pixels)))
    mse_c = (mse1 + mse2 * 0.8 + mse4 * 0.64) / (1.0 + 0.8 + 0.64)
    loss = float(lmbda) * (255.0 ** 2) * mse_c + bpp

    return {
        'bpp_loss': bpp,
        'mse_loss_ds1': mse1,
        'mse_loss_ds2': mse2,
        'mse_loss_ds4': mse4,
        'mse_loss': mse_c,
        # TODO(synk): metrics='ms-ssim' branch not implemented; the PyTorch
        # module returns None for these fields when metrics='mse'.
        'ms_ssim_loss_ds1': None,
        'ms_ssim_loss_ds2': None,
        'ms_ssim_loss_ds4': None,
        'ms_ssim_loss': None,
        'loss': loss,
    }


# ----------------------------- test harness --------------------------------
def _reference(output, target, lmbda=0.01):
    N, C, H, W = target.shape
    num_pixels = N * H * W
    bpp = sum(jnp.sum(jnp.log(l)) / (-math.log(2) * num_pixels)
              for l in output['likelihoods'].values())
    m1 = jnp.mean((output['x_hat'] - target) ** 2)
    m2 = jnp.mean((output['x_hat_ds2'] - target) ** 2)
    m4 = jnp.mean((output['x_hat_ds4'] - target) ** 2)
    mse = (m1 + m2 * 0.8 + m4 * 0.64) / (1 + 0.8 + 0.64)
    return {'bpp': bpp, 'mse': mse, 'loss': lmbda * 255.0 ** 2 * mse + bpp}


def _make_inputs(key, N, C, H, W, lk_c=4):
    k1, k2, k3, k4, k5, k6 = jax.random.split(key, 6)
    target = jax.random.uniform(k1, (N, C, H, W), jnp.float32)
    x_hat = jnp.clip(target + 0.05 * jax.random.normal(k2, (N, C, H, W)), 0.0, 1.0)
    x_hat_ds2 = jnp.clip(target + 0.10 * jax.random.normal(k3, (N, C, H, W)), 0.0, 1.0)
    x_hat_ds4 = jnp.clip(target + 0.20 * jax.random.normal(k4, (N, C, H, W)), 0.0, 1.0)
    lk_y = jax.random.uniform(k5, (N, lk_c, H // 4, W // 4), jnp.float32,
                              minval=0.05, maxval=1.0)
    lk_z = jax.random.uniform(k6, (N, lk_c, H // 8, W // 8), jnp.float32,
                              minval=0.05, maxval=1.0)
    out = {'x_hat': x_hat, 'x_hat_ds2': x_hat_ds2, 'x_hat_ds4': x_hat_ds4,
           'likelihoods': {'y': lk_y, 'z': lk_z}}
    return out, target


if __name__ == "__main__":
    key = jax.random.PRNGKey(0)
    k_a, k_b = jax.random.split(key)

    # Case 1: default tiling (single reduction step per core, padded rows).
    out1, tgt1 = _make_inputs(k_a, 2, 3, 16, 16)
    res1 = rate_distortion_loss_ms(out1, tgt1, lmbda=0.01)
    jax.block_until_ready(res1['loss'])
    ref1 = _reference(out1, tgt1, lmbda=0.01)
    assert jnp.allclose(res1['loss'], ref1['loss'], rtol=1e-5, atol=1e-6), \
        (res1['loss'], ref1['loss'])
    assert jnp.allclose(res1['bpp_loss'], ref1['bpp'], rtol=1e-5, atol=1e-6)
    assert jnp.allclose(res1['mse_loss'], ref1['mse'], rtol=1e-5, atol=1e-6)

    # Case 2: tiny max_block_rows forces several pipelined reduction steps
    # per core (exercises init/accumulate/finalize across the grid).
    out2, tgt2 = _make_inputs(k_b, 2, 3, 32, 32)
    res2 = rate_distortion_loss_ms(out2, tgt2, lmbda=0.02, max_block_rows=8)
    jax.block_until_ready(res2['loss'])
    ref2 = _reference(out2, tgt2, lmbda=0.02)
    assert jnp.allclose(res2['loss'], ref2['loss'], rtol=1e-5, atol=1e-6), \
        (res2['loss'], ref2['loss'])
    assert jnp.allclose(res2['bpp_loss'], ref2['bpp'], rtol=1e-5, atol=1e-6)
    assert jnp.allclose(res2['mse_loss'], ref2['mse'], rtol=1e-5, atol=1e-6)

    print("KERNEL_OK")
</pallas_src>

<mosaic_0001>
module attributes {stable_mosaic.version = 11 : i64} {
  func.func @_rd_partial_kernel(%arg0: i32, %arg1: i32, %arg2: memref<8x128xf32, #tpu.memory_space<vmem>>, %arg3: memref<8x128xf32, #tpu.memory_space<vmem>>, %arg4: memref<8x128xf32, #tpu.memory_space<vmem>>, %arg5: memref<8x128xf32, #tpu.memory_space<vmem>>, %arg6: memref<8x128xf32, #tpu.memory_space<vmem>>, %arg7: memref<8x128xf32, #tpu.memory_space<vmem>>, %arg8: memref<8x128xf32, #tpu.memory_space<vmem>>, %arg9: memref<8x128xf32, #tpu.memory_space<vmem>>, %arg10: memref<8x128xf32, #tpu.memory_space<vmem>>, %arg11: memref<8x128xf32, #tpu.memory_space<vmem>>) attributes {dimension_semantics = [#tpu.dimension_semantics<parallel>, #tpu.dimension_semantics<arbitrary>], iteration_bounds = array<i64: 2, 1>, scalar_prefetch = 0 : i64, scratch_operands = 4 : i64, tpu.core_type = #tpu.core_type<tc>, window_params = [{transform_indices = @transform_0, window_bounds = array<i64: 8, 128>}, {transform_indices = @transform_1, window_bounds = array<i64: 8, 128>}, {transform_indices = @transform_2, window_bounds = array<i64: 8, 128>}, {transform_indices = @transform_3, window_bounds = array<i64: 8, 128>}, {transform_indices = @transform_4, window_bounds = array<i64: 8, 128>}, {transform_indices = @transform_5, window_bounds = array<i64: 8, 128>}]} {
    %c0_i32 = arith.constant 0 : i32
    %0 = arith.cmpi eq, %arg1, %c0_i32 : i32
    %1 = arith.extui %0 : i1 to i32
    %c0_i32_0 = arith.constant 0 : i32
    %2 = arith.cmpi ne, %1, %c0_i32_0 : i32
    scf.if %2 {
      %cst = arith.constant 0.000000e+00 : f32
      %30 = vector.broadcast %cst : f32 to vector<8x128xf32>
      %c0_28 = arith.constant 0 : index
      %c0_29 = arith.constant 0 : index
      %31 = vector.load %arg8[%c0_28, %c0_29] : memref<8x128xf32, #tpu.memory_space<vmem>>, vector<8x128xf32>
      tpu.vector_store %arg8[%c0_28, %c0_29], %30 {strides = array<i32>} : memref<8x128xf32, #tpu.memory_space<vmem>>, vector<8x128xf32>,
      %cst_30 = arith.constant 0.000000e+00 : f32
      %32 = vector.broadcast %cst_30 : f32 to vector<8x128xf32>
      %c0_31 = arith.constant 0 : index
      %c0_32 = arith.constant 0 : index
      %33 = vector.load %arg9[%c0_31, %c0_32] : memref<8x128xf32, #tpu.memory_space<vmem>>, vector<8x128xf32>
      tpu.vector_store %arg9[%c0_31, %c0_32], %32 {strides = array<i32>} : memref<8x128xf32, #tpu.memory_space<vmem>>, vector<8x128xf32>,
      %cst_33 = arith.constant 0.000000e+00 : f32
      %34 = vector.broadcast %cst_33 : f32 to vector<8x128xf32>
      %c0_34 = arith.constant 0 : index
      %c0_35 = arith.constant 0 : index
      %35 = vector.load %arg10[%c0_34, %c0_35] : memref<8x128xf32, #tpu.memory_space<vmem>>, vector<8x128xf32>
      tpu.vector_store %arg10[%c0_34, %c0_35], %34 {strides = array<i32>} : memref<8x128xf32, #tpu.memory_space<vmem>>, vector<8x128xf32>,
      %cst_36 = arith.constant 0.000000e+00 : f32
      %36 = vector.broadcast %cst_36 : f32 to vector<8x128xf32>
      %c0_37 = arith.constant 0 : index
      %c0_38 = arith.constant 0 : index
      %37 = vector.load %arg11[%c0_37, %c0_38] : memref<8x128xf32, #tpu.memory_space<vmem>>, vector<8x128xf32>
      tpu.vector_store %arg11[%c0_37, %c0_38], %36 {strides = array<i32>} : memref<8x128xf32, #tpu.memory_space<vmem>>, vector<8x128xf32>,
    } else {
    }
    %c0 = arith.constant 0 : index
    %c0_1 = arith.constant 0 : index
    %3 = vector.load %arg5[%c0, %c0_1] : memref<8x128xf32, #tpu.memory_space<vmem>>, vector<8x128xf32>
    %c0_2 = arith.constant 0 : index
    %c0_3 = arith.constant 0 : index
    %4 = vector.load %arg2[%c0_2, %c0_3] : memref<8x128xf32, #tpu.memory_space<vmem>>, vector<8x128xf32>
    %5 = arith.subf %4, %3 : vector<8x128xf32>
    %c0_4 = arith.constant 0 : index
    %c0_5 = arith.constant 0 : index
    %6 = vector.load %arg3[%c0_4, %c0_5] : memref<8x128xf32, #tpu.memory_space<vmem>>, vector<8x128xf32>
    %7 = arith.subf %6, %3 : vector<8x128xf32>
    %c0_6 = arith.constant 0 : index
    %c0_7 = arith.constant 0 : index
    %8 = vector.load %arg4[%c0_6, %c0_7] : memref<8x128xf32, #tpu.memory_space<vmem>>, vector<8x128xf32>
    %9 = arith.subf %8, %3 : vector<8x128xf32>
    %c0_8 = arith.constant 0 : index
    %c0_9 = arith.constant 0 : index
    %10 = vector.load %arg8[%c0_8, %c0_9] : memref<8x128xf32, #tpu.memory_space<vmem>>, vector<8x128xf32>
    %11 = arith.mulf %5, %5 : vector<8x128xf32>
    %12 = arith.addf %10, %11 : vector<8x128xf32>
    %c0_10 = arith.constant 0 : index
    %c0_11 = arith.constant 0 : index
    %13 = vector.load %arg8[%c0_10, %c0_11] : memref<8x128xf32, #tpu.memory_space<vmem>>, vector<8x128xf32>
    tpu.vector_store %arg8[%c0_10, %c0_11], %12 {strides = array<i32>} : memref<8x128xf32, #tpu.memory_space<vmem>>, vector<8x128xf32>,
    %c0_12 = arith.constant 0 : index
    %c0_13 = arith.constant 0 : index
    %14 = vector.load %arg9[%c0_12, %c0_13] : memref<8x128xf32, #tpu.memory_space<vmem>>, vector<8x128xf32>
    %15 = arith.mulf %7, %7 : vector<8x128xf32>
    %16 = arith.addf %14, %15 : vector<8x128xf32>
    %c0_14 = arith.constant 0 : index
    %c0_15 = arith.constant 0 : index
    %17 = vector.load %arg9[%c0_14, %c0_15] : memref<8x128xf32, #tpu.memory_space<vmem>>, vector<8x128xf32>
    tpu.vector_store %arg9[%c0_14, %c0_15], %16 {strides = array<i32>} : memref<8x128xf32, #tpu.memory_space<vmem>>, vector<8x128xf32>,
    %c0_16 = arith.constant 0 : index
    %c0_17 = arith.constant 0 : index
    %18 = vector.load %arg10[%c0_16, %c0_17] : memref<8x128xf32, #tpu.memory_space<vmem>>, vector<8x128xf32>
    %19 = arith.mulf %9, %9 : vector<8x128xf32>
    %20 = arith.addf %18, %19 : vector<8x128xf32>
    %c0_18 = arith.constant 0 : index
    %c0_19 = arith.constant 0 : index
    %21 = vector.load %arg10[%c0_18, %c0_19] : memref<8x128xf32, #tpu.memory_space<vmem>>, vector<8x128xf32>
    tpu.vector_store %arg10[%c0_18, %c0_19], %20 {strides = array<i32>} : memref<8x128xf32, #tpu.memory_space<vmem>>, vector<8x128xf32>,
    %c0_20 = arith.constant 0 : index
    %c0_21 = arith.constant 0 : index
    %22 = vector.load %arg11[%c0_20, %c0_21] : memref<8x128xf32, #tpu.memory_space<vmem>>, vector<8x128xf32>
    %c0_22 = arith.constant 0 : index
    %c0_23 = arith.constant 0 : index
    %23 = vector.load %arg6[%c0_22, %c0_23] : memref<8x128xf32, #tpu.memory_space<vmem>>, vector<8x128xf32>
    %24 = math.log %23 : vector<8x128xf32>
    %25 = arith.addf %22, %24 : vector<8x128xf32>
    %c0_24 = arith.constant 0 : index
    %c0_25 = arith.constant 0 : index
    %26 = vector.load %arg11[%c0_24, %c0_25] : memref<8x128xf32, #tpu.memory_space<vmem>>, vector<8x128xf32>
    tpu.vector_store %arg11[%c0_24, %c0_25], %25 {strides = array<i32>} : memref<8x128xf32, #tpu.memory_space<vmem>>, vector<8x128xf32>,
    %c0_i32_26 = arith.constant 0 : i32
    %27 = arith.cmpi eq, %arg1, %c0_i32_26 : i32
    %28 = arith.extui %27 : i1 to i32
    %c0_i32_27 = arith.constant 0 : i32
    %29 = arith.cmpi ne, %28, %c0_i32_27 : i32
    scf.if %29 {
      %c0_28 = arith.constant 0 : index
      %c0_29 = arith.constant 0 : index
      %30 = vector.load %arg8[%c0_28, %c0_29] : memref<8x128xf32, #tpu.memory_space<vmem>>, vector<8x128xf32>
      %31 = vector.shape_cast %30 : vector<8x128xf32> to vector<1x8x128xf32>
      %cst = arith.constant dense<0.000000e+00> : vector<1xf32>
      %32 = vector.multi_reduction <add>, %31, %cst [1, 2] : vector<1x8x128xf32> to vector<1xf32>
      %33 = vector.shape_cast %32 : vector<1xf32> to vector<1x1x1xf32>
      %34 = vector.extract %33[0, 0, 0] : f32 from vector<1x1x1xf32>
      %c0_30 = arith.constant 0 : index
      %c0_31 = arith.constant 0 : index
      %35 = vector.load %arg9[%c0_30, %c0_31] : memref<8x128xf32, #tpu.memory_space<vmem>>, vector<8x128xf32>
      %36 = vector.shape_cast %35 : vector<8x128xf32> to vector<1x8x128xf32>
      %cst_32 = arith.constant dense<0.000000e+00> : vector<1xf32>
      %37 = vector.multi_reduction <add>, %36, %cst_32 [1, 2] : vector<1x8x128xf32> to vector<1xf32>
      %38 = vector.shape_cast %37 : vector<1xf32> to vector<1x1x1xf32>
      %39 = vector.extract %38[0, 0, 0] : f32 from vector<1x1x1xf32>
      %c0_33 = arith.constant 0 : index
      %c0_34 = arith.constant 0 : index
      %40 = vector.load %arg10[%c0_33, %c0_34] : memref<8x128xf32, #tpu.memory_space<vmem>>, vector<8x128xf32>
      %41 = vector.shape_cast %40 : vector<8x128xf32> to vector<1x8x128xf32>
      %cst_35 = arith.constant dense<0.000000e+00> : vector<1xf32>
      %42 = vector.multi_reduction <add>, %41, %cst_35 [1, 2] : vector<1x8x128xf32> to vector<1xf32>
      %43 = vector.shape_cast %42 : vector<1xf32> to vector<1x1x1xf32>
      %44 = vector.extract %43[0, 0, 0] : f32 from vector<1x1x1xf32>
      %c0_36 = arith.constant 0 : index
      %c0_37 = arith.constant 0 : index
      %45 = vector.load %arg11[%c0_36, %c0_37] : memref<8x128xf32, #tpu.memory_space<vmem>>, vector<8x128xf32>
      %46 = vector.shape_cast %45 : vector<8x128xf32> to vector<1x8x128xf32>
      %cst_38 = arith.constant dense<0.000000e+00> : vector<1xf32>
      %47 = vector.multi_reduction <add>, %46, %cst_38 [1, 2] : vector<1x8x128xf32> to vector<1xf32>
      %48 = vector.shape_cast %47 : vector<1xf32> to vector<1x1x1xf32>
      %49 = vector.extract %48[0, 0, 0] : f32 from vector<1x1x1xf32>
      %50 = tpu.iota {dimensions = array<i32: 1>} : vector<8x128xi32>
      %c0_i32_39 = arith.constant 0 : i32
      %51 = vector.broadcast %c0_i32_39 : i32 to vector<8x128xi32>
      %52 = arith.cmpi eq, %50, %51 : vector<8x128xi32>
      %cst_40 = arith.constant 0.000000e+00 : f32
      %53 = vector.broadcast %34 : f32 to vector<8x128xf32>
      %54 = vector.broadcast %cst_40 : f32 to vector<8x128xf32>
      %55 = arith.select %52, %53, %54 : vector<8x128xi1>, vector<8x128xf32>
      %c1_i32 = arith.constant 1 : i32
      %56 = vector.broadcast %c1_i32 : i32 to vector<8x128xi32>
      %57 = arith.cmpi eq, %50, %56 : vector<8x128xi32>
      %58 = vector.broadcast %39 : f32 to vector<8x128xf32>
      %59 = arith.select %57, %58, %55 : vector<8x128xi1>, vector<8x128xf32>
      %c2_i32 = arith.constant 2 : i32
      %60 = vector.broadcast %c2_i32 : i32 to vector<8x128xi32>
      %61 = arith.cmpi eq, %50, %60 : vector<8x128xi32>
      %62 = vector.broadcast %44 : f32 to vector<8x128xf32>
      %63 = arith.select %61, %62, %59 : vector<8x128xi1>, vector<8x128xf32>
      %c3_i32 = arith.constant 3 : i32
      %64 = vector.broadcast %c3_i32 : i32 to vector<8x128xi32>
      %65 = arith.cmpi eq, %50, %64 : vector<8x128xi32>
      %66 = vector.broadcast %49 : f32 to vector<8x128xf32>
      %67 = arith.select %65, %66, %63 : vector<8x128xi1>, vector<8x128xf32>
      %c0_41 = arith.constant 0 : index
      %c0_42 = arith.constant 0 : index
      %68 = vector.load %arg7[%c0_41, %c0_42] : memref<8x128xf32, #tpu.memory_space<vmem>>, vector<8x128xf32>
      tpu.vector_store %arg7[%c0_41, %c0_42], %67 {strides = array<i32>} : memref<8x128xf32, #tpu.memory_space<vmem>>, vector<8x128xf32>,
    } else {
    }
    return
  }
  func.func @transform_0(%arg0: i32, %arg1: i32) -> (i32, i32) {
    %c1_i32 = arith.constant 1 : i32
    %0 = arith.muli %arg0, %c1_i32 : i32
    %1 = arith.addi %0, %arg1 : i32
    %c0_i32 = arith.constant 0 : i32
    %c0_i32_0 = arith.constant 0 : i32
    return %1, %c0_i32 : i32, i32
  }
  func.func @transform_1(%arg0: i32, %arg1: i32) -> (i32, i32) {
    %c1_i32 = arith.constant 1 : i32
    %0 = arith.muli %arg0, %c1_i32 : i32
    %1 = arith.addi %0, %arg1 : i32
    %c0_i32 = arith.constant 0 : i32
    %c0_i32_0 = arith.constant 0 : i32
    return %1, %c0_i32 : i32, i32
  }
  func.func @transform_2(%arg0: i32, %arg1: i32) -> (i32, i32) {
    %c1_i32 = arith.constant 1 : i32
    %0 = arith.muli %arg0, %c1_i32 : i32
    %1 = arith.addi %0, %arg1 : i32
    %c0_i32 = arith.constant 0 : i32
    %c0_i32_0 = arith.constant 0 : i32
    return %1, %c0_i32 : i32, i32
  }
  func.func @transform_3(%arg0: i32, %arg1: i32) -> (i32, i32) {
    %c1_i32 = arith.constant 1 : i32
    %0 = arith.muli %arg0, %c1_i32 : i32
    %1 = arith.addi %0, %arg1 : i32
    %c0_i32 = arith.constant 0 : i32
    %c0_i32_0 = arith.constant 0 : i32
    return %1, %c0_i32 : i32, i32
  }
  func.func @transform_4(%arg0: i32, %arg1: i32) -> (i32, i32) {
    %c1_i32 = arith.constant 1 : i32
    %0 = arith.muli %arg0, %c1_i32 : i32
    %1 = arith.addi %0, %arg1 : i32
    %c0_i32 = arith.constant 0 : i32
    %c0_i32_0 = arith.constant 0 : i32
    return %1, %c0_i32 : i32, i32
  }
  func.func @transform_5(%arg0: i32, %arg1: i32) -> (i32, i32) {
    %c0_i32 = arith.constant 0 : i32
    %c0_i32_0 = arith.constant 0 : i32
    return %arg0, %c0_i32 : i32, i32
  }
}

</mosaic_0001>

<bundles_post_ra>
// kernel: tpu_custom_call.1
= control target key start
LH: loop header
LB: loop body
LE: loop exit
PB: predicated region body
PF: predicated region fallthrough
CT: control target
= control target key end

     0   :  { %s1403_s0 = inlined_call_operand.hbm [shape: f32[16,128], index: 0, kind: input, shape index: {}]   ;;  %s1404_s1 = inlined_call_operand.hbm [shape: f32[16,128], index: 1, kind: input, shape index: {}]   ;;  %s1405_s2 = inlined_call_operand.hbm [shape: f32[16,128], index: 2, kind: input, shape index: {}]   ;;  %s1406_s3 = inlined_call_operand.hbm [shape: f32[16,128], index: 3, kind: input, shape index: {}]   ;;  %s1407_s4 = inlined_call_operand.hbm [shape: f32[16,128], index: 4, kind: input, shape index: {}]   ;;  %s1408_s5 = inlined_call_operand.hbm [shape: f32[16,128], index: 5, kind: output, shape index: {}]  }
   0x1   :  { %1419 = sst [smem:[#allocation24_spill]] %s1404_s1 }
   0x2   :  { %1420 = sst [smem:[#allocation25_spill]] %s1406_s3 }
   0x3   :  { %10 = vsyncpa [#allocation7], 0 }
   0x4   :  { %12 = vsyncpa [#allocation7 + $0x1], 0 }
   0x5   :  { %13 = vsyncpa [#allocation10], 0 }
   0x6   :  { %15 = vsyncpa [#allocation10 + $0x1], 0 }
   0x7   :  { %16 = vsyncpa [#allocation13], 0 }
   0x8   :  { %18 = vsyncpa [#allocation13 + $0x1], 0 }
   0x9   :  { %19 = vsyncpa [#allocation8], 0 }
   0xa   :  { %21 = vsyncpa [#allocation8 + $0x1], 0  ;;  %s1083_s18 = smov 0   ;;  %s1085_s19 = smov 0  }
   0xb   :  { %s1087_s20 = smov 0   ;;  %s1089_s21 = smov 0  }
   0xc   :  { %s1091_s22 = smov 0   ;;  %s1093_s23 = smov 0  }
   0xd LB: > { %1421 = sst [smem:[#allocation20_spill]] %s1041_s22  ;;  %s1114_s24 = sadd.s32 4294967295, %s1045_s23   ;;  %s1045_s23 = sphi %s1093_s23, %s27_s23   ;;  %s1041_s22 = sphi %s1091_s22, %s1450_s22   ;;  %s1037_s21 = sphi %s1089_s21, %s1449_s21   ;;  %s1033_s20 = sphi %s1087_s20, %s1453_s20   ;;  %s1029_s19 = sphi %s1085_s19, %s1452_s19   ;;  %s1025_s18 = sphi %s1083_s18, %s1451_s18  }
   0xe   : > { %1422 = sst [smem:[#allocation21_spill]] %s1045_s23  ;;  %s689_s25 = sadd.s32 4294967294, %s1045_s23  }
   0xf   : > { %s39_s26 = sadd.s32 1, %s1041_s22  ;;  %s48_s27 = sadd.s32 1, %s1033_s20 }
  0x10   : > { %p41_p0 = scmp.ge.s32.totalorder %s39_s26, 2  ;;  %p55_p1 = scmp.ne.s32.totalorder %s1033_s20, %s1029_s19 }
  0x11   : > { %p56_p2 = scmp.eq.s32.totalorder %s1045_s23, 0  ;;  %p61_p3 = scmp.ne.s32.totalorder %s1029_s19, %s1025_s18 }
  0x12   : > { %s1455_s26 = smov (%p41_p0, %s39_s26), 0  ;;  %p62_p5 = scmp.eq.s32.totalorder %s1114_s24, 0 }
  0x13   : > { %1423 = sst [smem:[#allocation22_spill]] %s1455_s26  ;;  %p1126_p4 = por %p56_p2, %p55_p1 }
  0x14   : > { %s45_s29 = ssub.s32 %s1041_s22, %s1455_s26  ;;  %p197_p6 = scmp.eq.s32.totalorder %s1114_s24, 1 }
  0x15   : > { %p46_p7 = scmp.eq.s32.totalorder %s45_s29, 0  ;;  %p1134_p8 = por %p62_p5, %p61_p3 }
  0x16   : > { %p1138_p9 = por %p197_p6, %p55_p1  ;;  %p203_p10 = scmp.eq.s32.totalorder %s689_s25, 1 }
  0x17   : > { %s1425_s30 = scalar_select %p1134_p8, 1, 0 }
  0x18   : > { %s1426_s6 = scalar_select %p1138_p9, 1, 0 }
  0x19   : > { %s1143_s7 = scalar_select %p46_p7, %s1033_s20, %s48_s27  }
  0x1a   : > { %p1145_p11 = por %p203_p10, %p61_p3  ;;  %p753_p13 = scmp.lt.s32.totalorder %s1045_s23, 2 }
  0x1b   : > { %1427 = sst [smem:[#allocation23_spill]] %s1143_s7  ;;  %s1409_s9 = sand.u32 1, %s1033_s20  }
  0x1c   : > { %s1428_s8 = scalar_select %p1145_p11, 1, 0 }
  0x1d   : > { %s1154_s10 = sshll.u32 %s1409_s9, 3  ;;  %s1157_s11 = sshll.u32 %s1041_s22, 7 }
  0x1e   : > { %p1161_p0 = pnand %p753_p13, %p1126_p4  ;;  %s1411_s13 = sand.u32 1, %s1045_s23  }
  0x1f   : > { %s1430_s1 = sld [smem:[#allocation24_spill]]  ;;  %s246_s17 = scalar_lea.vmem [#allocation9], %s1154_s10 }
  0x20   : > { %s1429_s12 = scalar_select %p1161_p0, 1, 0 }
  0x21   : > { %s254_s25 = sshll.u32 %s246_s17, 4  ;;  %s1179_s27 = scalar_lea.sflag [#allocation10], %s1411_s13  ;;  %s1174_s25 = int_to_ptr.vmem [resolvable:$true] %s254_s25 }
  0x22   : > { %p1185_p4 = pneg %p1161_p0 }
  0x25   : > { %s1170_s16 = scalar_lea.hbm %s1430_s1, %s1157_s11  ;;  %s810_s17 = scalar_lea.hbm %s1430_s1, 256 }
  0x26   : > { %s805_s28 = scalar_lea.hbm %s1170_s16, 128  ;;  %p811_p7 = scmp.lt.u32.totalorder %s1170_s16, %s1430_s1 }
  0x27   : > { %p806_p3 = scmp.ne.s32.totalorder %s1170_s16, %s805_s28  ;;  %p812_p10 = scmp.lt.u32.totalorder %s810_s17, %s805_s28 }
  0x28   : > { %p814_p12 = scmp.lt.u32.totalorder %s805_s28, %s1170_s16 }
  0x29   : > { %p808_p5 = pnand %p1185_p4, %p806_p3  ;;  %p813_p13 = por %p812_p10, %p811_p7 }
  0x2b   : > { %p809_p6 = pneg %p808_p5  ;;  %p815_p1 = por %p814_p12, %p813_p13 }
  0x2d   : > { %p816_p2 = pnand %p815_p1, %p809_p6 }
  0x2f   : > { %819 = shalt.err (!%p816_p2)
}
  0x30   : > { %s820_s13 = scalar_lea.vmem %s1174_s25, 128  ;;  %s1047_s14 = smov [#allocation9]  }
  0x31   : > { %p821_p3 = scmp.ne.s32.totalorder %s1174_s25, %s820_s13  ;;  %s825_s15 = sshll.u32 %s1047_s14, 4  ;;  %s826_s15 = int_to_ptr.vmem [resolvable:$false] %s825_s15 }
  0x32   : > { %s827_s26 = scalar_lea.vmem %s826_s15, 256  ;;  %p828_p9 = scmp.lt.s32.totalorder %s1174_s25, %s826_s15 }
  0x33   : > { %p823_p5 = pnand %p821_p3, %p1185_p4  ;;  %p829_p8 = scmp.lt.s32.totalorder %s827_s26, %s820_s13 }
  0x35   : > { %p824_p11 = pneg %p823_p5  ;;  %p830_p7 = por %p829_p8, %p828_p9 }
  0x37   : > { %p831_p10 = pnand %p830_p7, %p824_p11 }
  0x39   : > { %834 = shalt.err (!%p831_p10)
}
  0x3a   : > { %739 = dma.hbm_to_vmem [thread:$0]  (!%p1161_p0), %s1170_s16, 128, %s1174_s25, %s1179_s27  }
  0x3b   : > { %p1432_p12 = scmp.lt.s32.totalorder %s1045_s23, 3  ;;  %p1433_p1 = scmp.ge.s32.totalorder %s1045_s23, 1 }
  0x3c   : > { %s1435_s3 = sld [smem:[#allocation25_spill]]  ;;  %s284_s14 = scalar_lea.vmem [#allocation12], %s1154_s10 }
  0x3d   : > { %p1213_p2 = pnand %p1433_p1, %p1432_p12  ;;  %s292_s15 = sshll.u32 %s284_s14, 4  ;;  %s293_s15 = int_to_ptr.vmem [resolvable:$true] %s292_s15 }
  0x3e   : > { %s1436_s26 = sand.u32 1, %s1045_s23  }
  0x3f   : > { %s1434_s9 = scalar_select %p1213_p2, 1, 0 }
  0x40   : > { %s1226_s16 = scalar_lea.sflag [#allocation13], %s1436_s26 }
  0x42   : > { %s1221_s17 = scalar_lea.hbm %s1435_s3, %s1157_s11  ;;  %s840_s13 = scalar_lea.hbm %s1435_s3, 256 }
  0x43   : > { %s835_s25 = scalar_lea.hbm %s1221_s17, 128  ;;  %p841_p6 = scmp.lt.u32.totalorder %s1221_s17, %s1435_s3 }
  0x44   : > { %p836_p8 = scmp.ne.s32.totalorder %s1221_s17, %s835_s25  ;;  %p842_p13 = scmp.lt.u32.totalorder %s840_s13, %s835_s25 }
  0x45   : > { %p844_p5 = scmp.lt.u32.totalorder %s835_s25, %s1221_s17 }
  0x46   : > { %p838_p9 = pnand %p836_p8, %p1185_p4  ;;  %p843_p3 = por %p842_p13, %p841_p6 }
  0x48   : > { %p839_p11 = pneg %p838_p9  ;;  %p845_p7 = por %p844_p5, %p843_p3 }
  0x4a   : > { %p846_p10 = pnand %p845_p7, %p839_p11 }
  0x4c   : > { %849 = shalt.err (!%p846_p10)
}
  0x4d   : > { %s850_s14 = scalar_lea.vmem %s293_s15, 128  ;;  %s1048_s26 = smov [#allocation12]  }
  0x4e   : > { %p851_p12 = scmp.ne.s32.totalorder %s293_s15, %s850_s14  ;;  %s855_s23 = sshll.u32 %s1048_s26, 4  ;;  %s856_s23 = int_to_ptr.vmem [resolvable:$false] %s855_s23 }
  0x4f   : > { %s857_s1 = scalar_lea.vmem %s856_s23, 256  ;;  %p858_p9 = scmp.lt.s32.totalorder %s293_s15, %s856_s23 }
  0x50   : > { %p853_p1 = pnand %p851_p12, %p1185_p4  ;;  %p859_p2 = scmp.lt.s32.totalorder %s857_s1, %s850_s14 }
  0x52   : > { %p854_p8 = pneg %p853_p1  ;;  %p860_p0 = por %p859_p2, %p858_p9 }
  0x54   : > { %p861_p6 = pnand %p860_p0, %p854_p8 }
  0x56   : > { %864 = shalt.err (!%p861_p6)
}
  0x57   : > { %p1437_p13 = scmp.ne.s32.totalorder %s1429_s12, 0  ;;  %s1250_s25 = scalar_lea.hbm %s1403_s0, %s1157_s11 }
  0x58   : > { %s227_s23 = scalar_lea.vmem [#allocation6], %s1154_s10  ;;  %s1438_s28 = sand.u32 1, %s1033_s20  }
  0x59   : > { %745 = dma.hbm_to_vmem [thread:$0]  (!%p1437_p13), %s1221_s17, 128, %s293_s15, %s1226_s16  }
  0x5a   : > { %s235_s13 = sshll.u32 %s227_s23, 4  ;;  %s224_s14 = scalar_lea.sflag [#allocation7], %s1438_s28  ;;  %s236_s13 = int_to_ptr.vmem [resolvable:$true] %s235_s13 }
  0x5b   : > { %s865_s26 = scalar_lea.hbm %s1250_s25, 128  ;;  %s870_s1 = scalar_lea.hbm %s1403_s0, 256 }
  0x5c   : > { %p866_p0 = scmp.ne.s32.totalorder %s1250_s25, %s865_s26  ;;  %p871_p3 = scmp.lt.u32.totalorder %s1250_s25, %s1403_s0 }
  0x5d   : > { %p872_p5 = scmp.lt.u32.totalorder %s870_s1, %s865_s26  ;;  %p874_p10 = scmp.lt.u32.totalorder %s865_s26, %s1250_s25 }
  0x5e   : > { %p868_p2 = pnand %p866_p0, %p1185_p4 }
  0x5f   : > { %p873_p7 = por %p872_p5, %p871_p3 }
  0x60   : > { %p869_p11 = pneg %p868_p2 }
  0x61   : > { %p875_p12 = por %p874_p10, %p873_p7 }
  0x63   : > { %p876_p1 = pnand %p875_p12, %p869_p11 }
  0x65   : > { %879 = shalt.err (!%p876_p1)
}
  0x66   : > { %s880_s23 = scalar_lea.vmem %s236_s13, 128  ;;  %s1049_s28 = smov [#allocation6]  }
  0x67   : > { %p881_p8 = scmp.ne.s32.totalorder %s236_s13, %s880_s23  ;;  %s885_s3 = sshll.u32 %s1049_s28, 4  ;;  %s886_s3 = int_to_ptr.vmem [resolvable:$false] %s885_s3 }
  0x68   : > { %s887_s17 = scalar_lea.vmem %s886_s3, 256  ;;  %p888_p0 = scmp.lt.s32.totalorder %s236_s13, %s886_s3 }
  0x69   : > { %p883_p9 = pnand %p881_p8, %p1185_p4  ;;  %p889_p2 = scmp.lt.s32.totalorder %s887_s17, %s880_s23 }
  0x6b   : > { %p884_p6 = pneg %p883_p9  ;;  %p890_p13 = por %p889_p2, %p888_p0 }
  0x6d   : > { %p891_p3 = pnand %p890_p13, %p884_p6 }
  0x6f   : > { %894 = shalt.err (!%p891_p3)
}
  0x70   : > { %p1439_p5 = scmp.ne.s32.totalorder %s1429_s12, 0  ;;  %s1276_s1 = scalar_lea.hbm %s1405_s2, %s1157_s11 }
  0x71   : > { %s265_s3 = scalar_lea.vmem [#allocation11], %s1154_s10  ;;  %s895_s7 = scalar_lea.hbm %s1276_s1, 128 }
  0x72   : > { %736 = dma.hbm_to_vmem [thread:$0]  (!%p1439_p5), %s1250_s25, 128, %s236_s13, %s224_s14  }
  0x73   : > { %s273_s22 = sshll.u32 %s265_s3, 4  ;;  %p896_p13 = scmp.ne.s32.totalorder %s1276_s1, %s895_s7  ;;  %s274_s22 = int_to_ptr.vmem [resolvable:$true] %s273_s22 }
  0x74   : > { %s900_s25 = scalar_lea.hbm %s1405_s2, 256  ;;  %p901_p10 = scmp.lt.u32.totalorder %s1276_s1, %s1405_s2 }
  0x75   : > { %p898_p11 = pnand %p896_p13, %p1185_p4  ;;  %p902_p12 = scmp.lt.u32.totalorder %s900_s25, %s895_s7 }
  0x76   : > { %p904_p8 = scmp.lt.u32.totalorder %s895_s7, %s1276_s1 }
  0x77   : > { %p899_p7 = pneg %p898_p11  ;;  %p903_p1 = por %p902_p12, %p901_p10 }
  0x79   : > { %p905_p9 = por %p904_p8, %p903_p1 }
  0x7b   : > { %p906_p6 = pnand %p905_p9, %p899_p7 }
  0x7d   : > { %909 = shalt.err (!%p906_p6)
}
  0x7e   : > { %s910_s17 = scalar_lea.vmem %s274_s22, 128  ;;  %s1050_s26 = smov [#allocation11]  }
  0x7f   : > { %p911_p0 = scmp.ne.s32.totalorder %s274_s22, %s910_s17  ;;  %s915_s15 = sshll.u32 %s1050_s26, 4  ;;  %s916_s15 = int_to_ptr.vmem [resolvable:$false] %s915_s15 }
  0x80   : > { %s917_s3 = scalar_lea.vmem %s916_s15, 256  ;;  %p918_p13 = scmp.lt.s32.totalorder %s274_s22, %s916_s15 }
  0x81   : > { %p913_p2 = pnand %p911_p0, %p1185_p4  ;;  %p919_p11 = scmp.lt.s32.totalorder %s917_s3, %s910_s17 }
  0x83   : > { %p914_p3 = pneg %p913_p2  ;;  %p920_p5 = por %p919_p11, %p918_p13 }
  0x85   : > { %p921_p10 = pnand %p920_p5, %p914_p3 }
  0x87   : > { %924 = shalt.err (!%p921_p10)
}
  0x88   : > { %p1440_p12 = scmp.ne.s32.totalorder %s1429_s12, 0  ;;  %s1301_s28 = scalar_lea.hbm %s1407_s4, %s1157_s11 }
  0x89   : > { %s303_s25 = scalar_lea.vmem [#allocation14], %s1154_s10  ;;  %s925_s14 = scalar_lea.hbm %s1301_s28, 128 }
  0x8a   : > { %742 = dma.hbm_to_vmem [thread:$0]  (!%p1440_p12), %s1276_s1, 128, %s274_s22, %s1179_s27  }
  0x8b   : > { %s311_s13 = sshll.u32 %s303_s25, 4  ;;  %p926_p5 = scmp.ne.s32.totalorder %s1301_s28, %s925_s14  ;;  %s312_s13 = int_to_ptr.vmem [resolvable:$true] %s311_s13 }
  0x8c   : > { %s930_s27 = scalar_lea.hbm %s1407_s4, 256  ;;  %p931_p8 = scmp.lt.u32.totalorder %s1301_s28, %s1407_s4 }
  0x8d   : > { %p928_p7 = pnand %p926_p5, %p1185_p4  ;;  %p932_p9 = scmp.lt.u32.totalorder %s930_s27, %s925_s14 }
  0x8e   : > { %p934_p0 = scmp.lt.u32.totalorder %s925_s14, %s1301_s28 }
  0x8f   : > { %p929_p1 = pneg %p928_p7  ;;  %p933_p6 = por %p932_p9, %p931_p8 }
  0x91   : > { %p935_p2 = por %p934_p0, %p933_p6 }
  0x93   : > { %p936_p3 = pnand %p935_p2, %p929_p1 }
  0x95   : > { %939 = shalt.err (!%p936_p3)
}
  0x96   : > { %s940_s10 = scalar_lea.vmem %s312_s13, 128  ;;  %s1051_s11 = smov [#allocation14]  }
  0x97   : > { %p941_p13 = scmp.ne.s32.totalorder %s312_s13, %s940_s10  ;;  %s945_s15 = sshll.u32 %s1051_s11, 4  ;;  %s946_s15 = int_to_ptr.vmem [resolvable:$false] %s945_s15 }
  0x98   : > { %s947_s3 = scalar_lea.vmem %s946_s15, 256  ;;  %p948_p5 = scmp.lt.s32.totalorder %s312_s13, %s946_s15 }
  0x99   : > { %p943_p11 = pnand %p941_p13, %p1185_p4  ;;  %p949_p7 = scmp.lt.s32.totalorder %s947_s3, %s940_s10 }
  0x9b   : > { %p944_p10 = pneg %p943_p11  ;;  %p950_p12 = por %p949_p7, %p948_p5 }
  0x9d   : > { %p951_p8 = pnand %p950_p12, %p944_p10 }
  0x9f   : > { %954 = shalt.err (!%p951_p8)
}
  0xa0   : > { %p1441_p9 = scmp.ne.s32.totalorder %s1429_s12, 0  ;;  %p1442_p1 = scmp.ne.s32.totalorder %s1434_s9, 0 }
  0xa1   : > { %s1325_s29 = sand.u32 (!%p1442_p1), 1, %s1029_s19   ;;  %p1443_p4 = scmp.ne.s32.totalorder (!%p1442_p1), %s1425_s30, 0 }
  0xa2   : > { %748 = dma.hbm_to_vmem [thread:$0]  (!%p1441_p9), %s1301_s28, 128, %s312_s13, %s1226_s16  }
  0xa3   : > { %320 = sbr.rel (%p1442_p1) target bundleno = 413 (0x19d), region = 40  ;;  %s1328_s7 = sshll.u32 (!%p1442_p1), %s1325_s29, 3 }
  0xa4   : > { %s323_s23 = scalar_lea.sflag (!%p1442_p1), [#allocation7], %s1325_s29  ;;  %s326_s25 = scalar_lea.vmem (!%p1442_p1), [#allocation6], %s1328_s7 }
  0xaa   : > { %1008 = dma.done.wait (%p1443_p4), %s323_s23, 128  }
  0xab   : > { %1010 = vsyncadd (%p1443_p4), %s323_s23, 4294967168  ;;  %s331_s12 = sand.u32 1, %s1114_s24   ;;  %s335_s16 = scalar_lea.vmem [#allocation9], %s1328_s7 }
  0xac   : > { %s332_s9 = scalar_lea.sflag [#allocation10], %s331_s12 }
  0xad   : > { %1012 = dma.done.wait (%p1443_p4), %s332_s9, 256  }
  0xae   : > { %1014 = vsyncadd (%p1443_p4), %s332_s9, 4294967040  ;;  %s344_s28 = scalar_lea.vmem [#allocation11], %s1328_s7  ;;  %s350_s13 = scalar_lea.sflag [#allocation13], %s331_s12 }
  0xaf   : > { %s353_s14 = scalar_lea.vmem [#allocation12], %s1328_s7 }
  0xb0   : > { %1016 = dma.done.wait (%p1443_p4), %s350_s13, 256  }
  0xb1   : > { %1018 = vsyncadd (%p1443_p4), %s350_s13, 4294967040  ;;  %v422_v0 = vld [vmem:[%s353_s14] sm:$0xff]  ;;  %v427_v1 = vld [vmem:[%s344_s28] sm:$0xff]  ;;  %s362_s24 = scalar_lea.vmem [#allocation14], %s1328_s7  ;;  %v490_v41 = vlaneseq  ;;  %s710_s27 = sshll.u32 %s1037_s21, 7 }
  0xb2   : > { %v423_v2 = vld [vmem:[%s326_s25] sm:$0xff]  ;;  %v428_v3 = vsub.f32 %v427_v1, %v422_v0  ;;  %v425_v5 = vld [vmem:[%s335_s16] sm:$0xff]  ;;  %s408_s1 = scalar_lea.vmem [#allocation15], %s1328_s7  ;;  %s1354_s3 = scalar_lea.hbm %s1408_s5, %s710_s27 }
  0xb3   : > { %v424_v4 = vsub.f32 %v423_v2, %v422_v0  ;;  %v442_v6 = vld [vmem:[%s362_s24] sm:$0xff]  ;;  %v426_v7 = vsub.f32 %v425_v5, %v422_v0  ;;  %v491_v42 = vand.u32 127, %v490_v41  ;;  %s519_s22 = sshll.u32 %s408_s1, 4  ;;  %s506_s23 = scalar_lea.sflag [#allocation8], %s1325_s29  ;;  %s1356_s22 = int_to_ptr.vmem [resolvable:$true] %s519_s22 }
  0xb4   : > { %803 = vlog2.f32 %v442_v6  ;;  %v438_v8 = vmul.f32 %v428_v3, %v428_v3  ;;  %s955_s21 = scalar_lea.vmem %s1356_s22, 128  ;;  %p1444_p6 = scmp.ne.s32.totalorder %s1426_s6, 0 }
  0xb5   : > { %v430_v9 = vmul.f32 %v424_v4, %v424_v4  ;;  %v434_v10 = vmul.f32 %v426_v7, %v426_v7  ;;  %vm492_vm0 = vcmp.eq.s32.totalorder %v491_v42, 0  ;;  %vm495_vm1 = vcmp.eq.s32.totalorder %v491_v42, 1  ;;  %p956_p12 = scmp.ne.s32.totalorder %s1356_s22, %s955_s21  ;;  %s1052_s7 = smov [#allocation15]  }
  0xb6   : > { %471 = vadd.xlane.f32.xlu1 %v438_v8  ;;  %vm498_vm2 = vcmp.eq.s32.totalorder %v491_v42, 2  ;;  %vm501_vm3 = vcmp.eq.s32.totalorder %v491_v42, 3  ;;  %s959_s25 = sshll.u32 %s1052_s7, 4  ;;  %s960_s25 = int_to_ptr.vmem [resolvable:$false] %s959_s25 }
  0xb7   : > { %451 = vadd.xlane.f32.xlu0 %v430_v9  ;;  %p957_p0 = pnand %p956_p12, %p1444_p6  ;;  %s961_s12 = scalar_lea.vmem %s960_s25, 256 }
  0xb8   : > { %p962_p3 = scmp.lt.s32.totalorder %s1356_s22, %s960_s25  ;;  %p963_p13 = scmp.lt.s32.totalorder %s961_s12, %s955_s21 }
  0xb9   : > { %p958_p2 = pneg %p957_p0 }
  0xba   : > { %p964_p11 = por %p963_p13, %p962_p3 }
  0xbb   : > { %461 = vadd.xlane.f32.xlu0 %v434_v10 }
  0xbc   : > { %p965_p10 = pnand %p964_p11, %p958_p2 }
  0xbe   : > { %v804_v11 = vpop.eup %803 }
  0xbf   : > { %v444_v12 = vmul.f32 0.6931472, %v804_v11 }
  0xc1   : > { %481 = vadd.xlane.f32.xlu1 %v444_v12 }
 0x143   : > { %v472_v13 = vpop.xlane.xlu1 %471 }
 0x144   : > { %v452_v14 = vpop.xlane.xlu0 %451  ;;  %v473_v15 = vrot.slane %v472_v13, 4 }
 0x145   : > { %v453_v16 = vrot.slane %v452_v14, 4 }
 0x146   : > { %v474_v17 = vadd.f32 %v473_v15, %v472_v13 }
 0x147   : > { %v454_v18 = vadd.f32 %v453_v16, %v452_v14 }
 0x148   : > { %v462_v19 = vpop.xlane.xlu0 %461  ;;  %v475_v20 = vrot.slane %v474_v17, 2 }
 0x149   : > { %v455_v21 = vrot.slane %v454_v18, 2  ;;  %v463_v22 = vrot.slane %v462_v19, 4 }
 0x14a   : > { %v476_v25 = vadd.f32 %v475_v20, %v474_v17 }
 0x14b   : > { %v464_v23 = vadd.f32 %v463_v22, %v462_v19  ;;  %v456_v24 = vadd.f32 %v455_v21, %v454_v18 }
 0x14c   : > { %v477_v32 = vrot.slane %v476_v25, 1 }
 0x14d   : > { %v465_v26 = vrot.slane %v464_v23, 2  ;;  %v457_v27 = vrot.slane %v456_v24, 1 }
 0x14e   : > { %v482_v28 = vpop.xlane.xlu1 %481  ;;  %v478_v37 = vadd.f32 %v477_v32, %v476_v25 }
 0x14f   : > { %v466_v29 = vadd.f32 %v465_v26, %v464_v23  ;;  %v483_v30 = vrot.slane %v482_v28, 4  ;;  %v458_v31 = vadd.f32 %v457_v27, %v456_v24 }
 0x151   : > { %v484_v33 = vadd.f32 %v483_v30, %v482_v28  ;;  %713 = vpush %v458_v31  ;;  %v467_v34 = vrot.slane %v466_v29, 1 }
 0x153   : > { %v485_v35 = vrot.slane %v484_v33, 2  ;;  %v468_v36 = vadd.f32 %v467_v34, %v466_v29 }
 0x155   : > { %v486_v38 = vadd.f32 %v485_v35, %v484_v33  ;;  %715 = vpush %v468_v36 }
 0x156   : > { %717 = vpush %v478_v37 }
 0x157   : > { %v487_v39 = vrot.slane %v486_v38, 1 }
 0x159   : > { %v488_v40 = vadd.f32 %v487_v39, %v486_v38 }
 0x15b   : > { %719 = vpush %v488_v40 }
 0x182   : > { %s714_s30 = spop %713 }
 0x183   : > { %v493_v43 = vstv %s714_s30 }
 0x184   : > { %v494_v45 = vsel %vm492_vm0, %v493_v43, 0.0 }
 0x186   : > { %s716_s17 = spop %715 }
 0x187   : > { %v496_v44 = vstv %s716_s17  ;;  %s718_s26 = spop %717 }
 0x188   : > { %v497_v46 = vsel %vm495_vm1, %v496_v44, %v494_v45  ;;  %v499_v47 = vstv %s718_s26 }
 0x189   : > { %v500_v48 = vsel %vm498_vm2, %v499_v47, %v497_v46 }
 0x18c   : > { %s720_s10 = spop %719 }
 0x18d   : > { %v502_v49 = vstv %s720_s10 }
 0x18e   : > { %v503_v50 = vsel %vm501_vm3, %v502_v49, %v500_v48 }
 0x18f   : > { %504 = vst [vmem:[%s408_s1] sm:$0xff] %v503_v50 }
 0x190   : > { %968 = shalt.err (!%p965_p10)
}
 0x191   : > { %s969_s29 = scalar_lea.hbm %s1354_s3, 128  ;;  %s973_s28 = scalar_lea.hbm %s1408_s5, 256 }
 0x192   : > { %p970_p5 = scmp.ne.s32.totalorder %s1354_s3, %s969_s29  ;;  %p974_p9 = scmp.lt.u32.totalorder %s1354_s3, %s1408_s5 }
 0x193   : > { %p975_p1 = scmp.lt.u32.totalorder %s973_s28, %s969_s29  ;;  %p977_p12 = scmp.lt.u32.totalorder %s969_s29, %s1354_s3 }
 0x194   : > { %p971_p7 = pnand %p970_p5, %p1444_p6 }
 0x195   : > { %p976_p4 = por %p975_p1, %p974_p9 }
 0x196   : > { %p972_p8 = pneg %p971_p7 }
 0x197   : > { %p978_p0 = por %p977_p12, %p976_p4 }
 0x199   : > { %p979_p2 = pnand %p978_p0, %p972_p8 }
 0x19b   : > { %982 = shalt.err (!%p979_p2)
}
 0x19c   : > { %731 = dma.vmem_to_hbm [thread:$0]  (%p1444_p6), %s1356_s22, 128, %s1354_s3, %s506_s23  }
 0x19d PF: > { %s1445_s24 = sld [smem:[#allocation21_spill]]  ;;  %s531_s30 = sand.u32 1, %s1025_s18  }
 0x19e   : > { %p1446_p3 = scmp.ne.s32.totalorder %s1428_s8, 0  ;;  %s532_s17 = scalar_lea.sflag [#allocation8], %s531_s30 }
 0x1a3   : > { %p1447_p13 = scmp.ge.s32.totalorder %s1445_s24, 2 }
 0x1a5   : > { %p750_p11 = pnand %p1447_p13, %p1446_p3 }
 0x1a7   : > { %1020 = dma.done.wait (!%p750_p11), %s532_s17, 128  }
 0x1a8   : > { %1022 = vsyncadd (!%p750_p11), %s532_s17, 4294967168  ;;  %s27_s23 = sadd.s32 1, %s1445_s24   ;;  %s1448_s6 = sld [smem:[#allocation23_spill]] }
 0x1a9   : > { %p24_p10 = scmp.ge.s32.totalorder %s27_s23, 4   ;;  %s1449_s21 = sld [smem:[#allocation20_spill]] }
 0x1aa   : > { %s1450_s22 = sld [smem:[#allocation22_spill]]  ;;  %s1451_s18 = smov %s1029_s19 }
 0x1ab   : > { %s1452_s19 = smov %s1033_s20  ;;  %26 = sbr.rel (!%p24_p10) target bundleno = 13 (0xd), region = 141 }
 0x1ae   : > { %s1453_s20 = smov %s1448_s6 }
 0x1b2   :  { %537 = vsyncpa [#allocation7], 1 }
 0x1b3   :  { %539 = vsyncpa [#allocation7 + $0x1], 1 }
 0x1b4   :  { %540 = vsyncpa [#allocation10], 1 }
 0x1b5   :  { %542 = vsyncpa [#allocation10 + $0x1], 1 }
 0x1b6   :  { %543 = vsyncpa [#allocation13], 1 }
 0x1b7   :  { %545 = vsyncpa [#allocation13 + $0x1], 1 }
 0x1b8   :  { %546 = vsyncpa [#allocation8], 1 }
 0x1b9   :  { %548 = vsyncpa [#allocation8 + $0x1], 1 }

</bundles_post_ra>
